<compile_context>
chip_gen: v7x
topology: tpu7x:2x2x1
jax: 0.10.0
libtpu: 0.0.40
codegen_flags: <defaults>
</compile_context>

<pallas_src>
import jax
import jax.numpy as jnp
from jax.experimental import pallas as pl
from jax.experimental.pallas import tpu as pltpu


def mlp_kernel(x_ref, w1_ref, b1_ref, w2_ref, b2_ref, o_ref):
    # x_ref : (F, Bp)   VMEM  (lane-dense: Bp is a multiple of 128)
    # w1_ref: (H, F)    SMEM  (PyTorch Linear weight layout)
    # b1_ref: (H,)      SMEM
    # w2_ref: (O, H)    SMEM
    # b2_ref: (O,)      SMEM
    # o_ref : (O, Bp)   VMEM
    n_feat = x_ref.shape[0]
    n_hid = w1_ref.shape[0]
    n_out = w2_ref.shape[0]

    # Load the F input rows once; each is a lane-dense (1, Bp) slab.
    x_rows = [x_ref[k:k + 1, :] for k in range(n_feat)]

    # Layer 1: h_j = relu(sum_k w1[j, k] * x_k + b1[j])  -- pure VPU FMAs,
    # scalar weights broadcast from SMEM, no MXU pass for a K=2 contraction.
    h_rows = []
    for j in range(n_hid):
        acc = x_rows[0] * w1_ref[j, 0]
        for k in range(1, n_feat):
            acc = acc + x_rows[k] * w1_ref[j, k]
        acc = acc + b1_ref[j]
        h_rows.append(jnp.maximum(acc, 0.0))

    # Layer 2: y_o = sum_j w2[o, j] * h_j + b2[o]  (K=10, still VPU FMAs).
    y_rows = []
    for o in range(n_out):
        acc = h_rows[0] * w2_ref[o, 0]
        for j in range(1, n_hid):
            acc = acc + h_rows[j] * w2_ref[o, j]
        acc = acc + b2_ref[o]
        y_rows.append(acc)

    # One lane-dense (O, Bp) store -> unmasked vst along the 128-lane axis.
    o_ref[...] = jnp.concatenate(y_rows, axis=0).astype(o_ref.dtype)


def net_forward(x, w1, b1, w2, b2):
    """Pallas forward of Net: relu(x @ w1.T + b1) @ w2.T + b2.

    x : (batch, n_features)  float32
    w1: (n_hidden, n_features), b1: (n_hidden,)   -- PyTorch Linear layout
    w2: (n_output, n_hidden),   b2: (n_output,)
    """
    n, f = x.shape
    h = w1.shape[0]
    o = w2.shape[0]

    # Lane-dense layout: batch -> lane axis, padded up to a multiple of 128.
    n_pad = pl.cdiv(n, 128) * 128
    x_t = jnp.zeros((f, n_pad), x.dtype).at[:, :n].set(x.T)

    def smem_spec():
        return pl.BlockSpec(memory_space=pltpu.MemorySpace.SMEM)

    def vmem_full(shape):
        return pl.BlockSpec(shape, lambda: (0,) * len(shape))

    # Advisory hint so XLA schedules this tiny custom call sensibly.
    flops = 2 * n * (f * h + h * o)
    bytes_accessed = 4 * (n * f + h * f + h + o * h + o + n * o)

    out_t = pl.pallas_call(
        mlp_kernel,
        out_shape=jax.ShapeDtypeStruct((o, n_pad), jnp.float32),
        in_specs=[
            vmem_full((f, n_pad)),   # x (transposed, padded)
            smem_spec(),             # w1 scalars
            smem_spec(),             # b1 scalars
            smem_spec(),             # w2 scalars
            smem_spec(),             # b2 scalars
        ],
        out_specs=vmem_full((o, n_pad)),
        cost_estimate=pl.CostEstimate(
            flops=flops, transcendentals=0, bytes_accessed=bytes_accessed),
    )(x_t, w1, b1, w2, b2)

    # Layout plumbing back to the PyTorch-visible (batch, n_output) shape.
    return out_t[:, :n].T


if __name__ == "__main__":
    # Shapes implied by the module's usage: x is cat of two (100, 2) blobs.
    n_features, n_hidden, n_output = 2, 10, 2
    batch = 200

    key = jax.random.PRNGKey(0)
    kx0, kx1, kw1, kb1, kw2, kb2 = jax.random.split(key, 6)

    # Reproduce the synthetic data: normal(mean=+2) and normal(mean=-2), cat.
    x0 = 2.0 + jax.random.normal(kx0, (100, 2), jnp.float32)
    x1 = -2.0 + jax.random.normal(kx1, (100, 2), jnp.float32)
    x = jnp.concatenate([x0, x1], axis=0).astype(jnp.float32)  # (200, 2)

    # Deterministic parameter init (uniform like nn.Linear's default scale),
    # stored in PyTorch layout: W (out, in), b (out,).
    def lin_init(kw, kb, fan_in, fan_out):
        bound = 1.0 / jnp.sqrt(jnp.float32(fan_in))
        w = jax.random.uniform(kw, (fan_out, fan_in), jnp.float32, -bound, bound)
        b = jax.random.uniform(kb, (fan_out,), jnp.float32, -bound, bound)
        return w, b

    w1, b1 = lin_init(kw1, kb1, n_features, n_hidden)
    w2, b2 = lin_init(kw2, kb2, n_hidden, n_output)

    out = jax.block_until_ready(net_forward(x, w1, b1, w2, b2))

    # Pure-JAX reference check of the forward semantics (full-precision dots).
    hp = jax.lax.Precision.HIGHEST
    ref = jnp.maximum(jnp.dot(x, w1.T, precision=hp) + b1, 0.0)
    ref = jnp.dot(ref, w2.T, precision=hp) + b2

    assert out.shape == (batch, n_output)
    assert jnp.allclose(out, ref, atol=1e-5, rtol=1e-5), float(
        jnp.max(jnp.abs(out - ref)))

    print("KERNEL_OK")
</pallas_src>

<mosaic_0001>
module attributes {stable_mosaic.version = 11 : i64} {
  func.func @mlp_kernel(%arg0: memref<2x256xf32, #tpu.memory_space<vmem>>, %arg1: memref<10x2xf32, #tpu.memory_space<smem>>, %arg2: memref<10xf32, #tpu.memory_space<smem>>, %arg3: memref<2x10xf32, #tpu.memory_space<smem>>, %arg4: memref<2xf32, #tpu.memory_space<smem>>, %arg5: memref<2x256xf32, #tpu.memory_space<vmem>>) attributes {dimension_semantics = [], scalar_prefetch = 0 : i64, scratch_operands = 0 : i64, tpu.core_type = #tpu.core_type<tc>} {
    %c0 = arith.constant 0 : index
    %c0_0 = arith.constant 0 : index
    %0 = vector.load %arg0[%c0, %c0_0] : memref<2x256xf32, #tpu.memory_space<vmem>>, vector<1x256xf32>
    %c1 = arith.constant 1 : index
    %c0_1 = arith.constant 0 : index
    %1 = vector.load %arg0[%c1, %c0_1] : memref<2x256xf32, #tpu.memory_space<vmem>>, vector<1x256xf32>
    %c0_2 = arith.constant 0 : index
    %c0_3 = arith.constant 0 : index
    %2 = memref.load %arg1[%c0_2, %c0_3] : memref<10x2xf32, #tpu.memory_space<smem>>
    %3 = vector.broadcast %2 : f32 to vector<1x256xf32>
    %4 = arith.mulf %0, %3 : vector<1x256xf32>
    %c0_4 = arith.constant 0 : index
    %c1_5 = arith.constant 1 : index
    %5 = memref.load %arg1[%c0_4, %c1_5] : memref<10x2xf32, #tpu.memory_space<smem>>
    %6 = vector.broadcast %5 : f32 to vector<1x256xf32>
    %7 = arith.mulf %1, %6 : vector<1x256xf32>
    %8 = arith.addf %4, %7 : vector<1x256xf32>
    %c0_6 = arith.constant 0 : index
    %9 = memref.load %arg2[%c0_6] : memref<10xf32, #tpu.memory_space<smem>>
    %10 = vector.broadcast %9 : f32 to vector<1x256xf32>
    %11 = arith.addf %8, %10 : vector<1x256xf32>
    %cst = arith.constant 0.000000e+00 : f32
    %12 = vector.broadcast %cst : f32 to vector<1x256xf32>
    %13 = arith.maximumf %11, %12 : vector<1x256xf32>
    %c1_7 = arith.constant 1 : index
    %c0_8 = arith.constant 0 : index
    %14 = memref.load %arg1[%c1_7, %c0_8] : memref<10x2xf32, #tpu.memory_space<smem>>
    %15 = vector.broadcast %14 : f32 to vector<1x256xf32>
    %16 = arith.mulf %0, %15 : vector<1x256xf32>
    %c1_9 = arith.constant 1 : index
    %c1_10 = arith.constant 1 : index
    %17 = memref.load %arg1[%c1_9, %c1_10] : memref<10x2xf32, #tpu.memory_space<smem>>
    %18 = vector.broadcast %17 : f32 to vector<1x256xf32>
    %19 = arith.mulf %1, %18 : vector<1x256xf32>
    %20 = arith.addf %16, %19 : vector<1x256xf32>
    %c1_11 = arith.constant 1 : index
    %21 = memref.load %arg2[%c1_11] : memref<10xf32, #tpu.memory_space<smem>>
    %22 = vector.broadcast %21 : f32 to vector<1x256xf32>
    %23 = arith.addf %20, %22 : vector<1x256xf32>
    %cst_12 = arith.constant 0.000000e+00 : f32
    %24 = vector.broadcast %cst_12 : f32 to vector<1x256xf32>
    %25 = arith.maximumf %23, %24 : vector<1x256xf32>
    %c2 = arith.constant 2 : index
    %c0_13 = arith.constant 0 : index
    %26 = memref.load %arg1[%c2, %c0_13] : memref<10x2xf32, #tpu.memory_space<smem>>
    %27 = vector.broadcast %26 : f32 to vector<1x256xf32>
    %28 = arith.mulf %0, %27 : vector<1x256xf32>
    %c2_14 = arith.constant 2 : index
    %c1_15 = arith.constant 1 : index
    %29 = memref.load %arg1[%c2_14, %c1_15] : memref<10x2xf32, #tpu.memory_space<smem>>
    %30 = vector.broadcast %29 : f32 to vector<1x256xf32>
    %31 = arith.mulf %1, %30 : vector<1x256xf32>
    %32 = arith.addf %28, %31 : vector<1x256xf32>
    %c2_16 = arith.constant 2 : index
    %33 = memref.load %arg2[%c2_16] : memref<10xf32, #tpu.memory_space<smem>>
    %34 = vector.broadcast %33 : f32 to vector<1x256xf32>
    %35 = arith.addf %32, %34 : vector<1x256xf32>
    %cst_17 = arith.constant 0.000000e+00 : f32
    %36 = vector.broadcast %cst_17 : f32 to vector<1x256xf32>
    %37 = arith.maximumf %35, %36 : vector<1x256xf32>
    %c3 = arith.constant 3 : index
    %c0_18 = arith.constant 0 : index
    %38 = memref.load %arg1[%c3, %c0_18] : memref<10x2xf32, #tpu.memory_space<smem>>
    %39 = vector.broadcast %38 : f32 to vector<1x256xf32>
    %40 = arith.mulf %0, %39 : vector<1x256xf32>
    %c3_19 = arith.constant 3 : index
    %c1_20 = arith.constant 1 : index
    %41 = memref.load %arg1[%c3_19, %c1_20] : memref<10x2xf32, #tpu.memory_space<smem>>
    %42 = vector.broadcast %41 : f32 to vector<1x256xf32>
    %43 = arith.mulf %1, %42 : vector<1x256xf32>
    %44 = arith.addf %40, %43 : vector<1x256xf32>
    %c3_21 = arith.constant 3 : index
    %45 = memref.load %arg2[%c3_21] : memref<10xf32, #tpu.memory_space<smem>>
    %46 = vector.broadcast %45 : f32 to vector<1x256xf32>
    %47 = arith.addf %44, %46 : vector<1x256xf32>
    %cst_22 = arith.constant 0.000000e+00 : f32
    %48 = vector.broadcast %cst_22 : f32 to vector<1x256xf32>
    %49 = arith.maximumf %47, %48 : vector<1x256xf32>
    %c4 = arith.constant 4 : index
    %c0_23 = arith.constant 0 : index
    %50 = memref.load %arg1[%c4, %c0_23] : memref<10x2xf32, #tpu.memory_space<smem>>
    %51 = vector.broadcast %50 : f32 to vector<1x256xf32>
    %52 = arith.mulf %0, %51 : vector<1x256xf32>
    %c4_24 = arith.constant 4 : index
    %c1_25 = arith.constant 1 : index
    %53 = memref.load %arg1[%c4_24, %c1_25] : memref<10x2xf32, #tpu.memory_space<smem>>
    %54 = vector.broadcast %53 : f32 to vector<1x256xf32>
    %55 = arith.mulf %1, %54 : vector<1x256xf32>
    %56 = arith.addf %52, %55 : vector<1x256xf32>
    %c4_26 = arith.constant 4 : index
    %57 = memref.load %arg2[%c4_26] : memref<10xf32, #tpu.memory_space<smem>>
    %58 = vector.broadcast %57 : f32 to vector<1x256xf32>
    %59 = arith.addf %56, %58 : vector<1x256xf32>
    %cst_27 = arith.constant 0.000000e+00 : f32
    %60 = vector.broadcast %cst_27 : f32 to vector<1x256xf32>
    %61 = arith.maximumf %59, %60 : vector<1x256xf32>
    %c5 = arith.constant 5 : index
    %c0_28 = arith.constant 0 : index
    %62 = memref.load %arg1[%c5, %c0_28] : memref<10x2xf32, #tpu.memory_space<smem>>
    %63 = vector.broadcast %62 : f32 to vector<1x256xf32>
    %64 = arith.mulf %0, %63 : vector<1x256xf32>
    %c5_29 = arith.constant 5 : index
    %c1_30 = arith.constant 1 : index
    %65 = memref.load %arg1[%c5_29, %c1_30] : memref<10x2xf32, #tpu.memory_space<smem>>
    %66 = vector.broadcast %65 : f32 to vector<1x256xf32>
    %67 = arith.mulf %1, %66 : vector<1x256xf32>
    %68 = arith.addf %64, %67 : vector<1x256xf32>
    %c5_31 = arith.constant 5 : index
    %69 = memref.load %arg2[%c5_31] : memref<10xf32, #tpu.memory_space<smem>>
    %70 = vector.broadcast %69 : f32 to vector<1x256xf32>
    %71 = arith.addf %68, %70 : vector<1x256xf32>
    %cst_32 = arith.constant 0.000000e+00 : f32
    %72 = vector.broadcast %cst_32 : f32 to vector<1x256xf32>
    %73 = arith.maximumf %71, %72 : vector<1x256xf32>
    %c6 = arith.constant 6 : index
    %c0_33 = arith.constant 0 : index
    %74 = memref.load %arg1[%c6, %c0_33] : memref<10x2xf32, #tpu.memory_space<smem>>
    %75 = vector.broadcast %74 : f32 to vector<1x256xf32>
    %76 = arith.mulf %0, %75 : vector<1x256xf32>
    %c6_34 = arith.constant 6 : index
    %c1_35 = arith.constant 1 : index
    %77 = memref.load %arg1[%c6_34, %c1_35] : memref<10x2xf32, #tpu.memory_space<smem>>
    %78 = vector.broadcast %77 : f32 to vector<1x256xf32>
    %79 = arith.mulf %1, %78 : vector<1x256xf32>
    %80 = arith.addf %76, %79 : vector<1x256xf32>
    %c6_36 = arith.constant 6 : index
    %81 = memref.load %arg2[%c6_36] : memref<10xf32, #tpu.memory_space<smem>>
    %82 = vector.broadcast %81 : f32 to vector<1x256xf32>
    %83 = arith.addf %80, %82 : vector<1x256xf32>
    %cst_37 = arith.constant 0.000000e+00 : f32
    %84 = vector.broadcast %cst_37 : f32 to vector<1x256xf32>
    %85 = arith.maximumf %83, %84 : vector<1x256xf32>
    %c7 = arith.constant 7 : index
    %c0_38 = arith.constant 0 : index
    %86 = memref.load %arg1[%c7, %c0_38] : memref<10x2xf32, #tpu.memory_space<smem>>
    %87 = vector.broadcast %86 : f32 to vector<1x256xf32>
    %88 = arith.mulf %0, %87 : vector<1x256xf32>
    %c7_39 = arith.constant 7 : index
    %c1_40 = arith.constant 1 : index
    %89 = memref.load %arg1[%c7_39, %c1_40] : memref<10x2xf32, #tpu.memory_space<smem>>
    %90 = vector.broadcast %89 : f32 to vector<1x256xf32>
    %91 = arith.mulf %1, %90 : vector<1x256xf32>
    %92 = arith.addf %88, %91 : vector<1x256xf32>
    %c7_41 = arith.constant 7 : index
    %93 = memref.load %arg2[%c7_41] : memref<10xf32, #tpu.memory_space<smem>>
    %94 = vector.broadcast %93 : f32 to vector<1x256xf32>
    %95 = arith.addf %92, %94 : vector<1x256xf32>
    %cst_42 = arith.constant 0.000000e+00 : f32
    %96 = vector.broadcast %cst_42 : f32 to vector<1x256xf32>
    %97 = arith.maximumf %95, %96 : vector<1x256xf32>
    %c8 = arith.constant 8 : index
    %c0_43 = arith.constant 0 : index
    %98 = memref.load %arg1[%c8, %c0_43] : memref<10x2xf32, #tpu.memory_space<smem>>
    %99 = vector.broadcast %98 : f32 to vector<1x256xf32>
    %100 = arith.mulf %0, %99 : vector<1x256xf32>
    %c8_44 = arith.constant 8 : index
    %c1_45 = arith.constant 1 : index
    %101 = memref.load %arg1[%c8_44, %c1_45] : memref<10x2xf32, #tpu.memory_space<smem>>
    %102 = vector.broadcast %101 : f32 to vector<1x256xf32>
    %103 = arith.mulf %1, %102 : vector<1x256xf32>
    %104 = arith.addf %100, %103 : vector<1x256xf32>
    %c8_46 = arith.constant 8 : index
    %105 = memref.load %arg2[%c8_46] : memref<10xf32, #tpu.memory_space<smem>>
    %106 = vector.broadcast %105 : f32 to vector<1x256xf32>
    %107 = arith.addf %104, %106 : vector<1x256xf32>
    %cst_47 = arith.constant 0.000000e+00 : f32
    %108 = vector.broadcast %cst_47 : f32 to vector<1x256xf32>
    %109 = arith.maximumf %107, %108 : vector<1x256xf32>
    %c9 = arith.constant 9 : index
    %c0_48 = arith.constant 0 : index
    %110 = memref.load %arg1[%c9, %c0_48] : memref<10x2xf32, #tpu.memory_space<smem>>
    %111 = vector.broadcast %110 : f32 to vector<1x256xf32>
    %112 = arith.mulf %0, %111 : vector<1x256xf32>
    %c9_49 = arith.constant 9 : index
    %c1_50 = arith.constant 1 : index
    %113 = memref.load %arg1[%c9_49, %c1_50] : memref<10x2xf32, #tpu.memory_space<smem>>
    %114 = vector.broadcast %113 : f32 to vector<1x256xf32>
    %115 = arith.mulf %1, %114 : vector<1x256xf32>
    %116 = arith.addf %112, %115 : vector<1x256xf32>
    %c9_51 = arith.constant 9 : index
    %117 = memref.load %arg2[%c9_51] : memref<10xf32, #tpu.memory_space<smem>>
    %118 = vector.broadcast %117 : f32 to vector<1x256xf32>
    %119 = arith.addf %116, %118 : vector<1x256xf32>
    %cst_52 = arith.constant 0.000000e+00 : f32
    %120 = vector.broadcast %cst_52 : f32 to vector<1x256xf32>
    %121 = arith.maximumf %119, %120 : vector<1x256xf32>
    %c0_53 = arith.constant 0 : index
    %c0_54 = arith.constant 0 : index
    %122 = memref.load %arg3[%c0_53, %c0_54] : memref<2x10xf32, #tpu.memory_space<smem>>
    %123 = vector.broadcast %122 : f32 to vector<1x256xf32>
    %124 = arith.mulf %13, %123 : vector<1x256xf32>
    %c0_55 = arith.constant 0 : index
    %c1_56 = arith.constant 1 : index
    %125 = memref.load %arg3[%c0_55, %c1_56] : memref<2x10xf32, #tpu.memory_space<smem>>
    %126 = vector.broadcast %125 : f32 to vector<1x256xf32>
    %127 = arith.mulf %25, %126 : vector<1x256xf32>
    %128 = arith.addf %124, %127 : vector<1x256xf32>
    %c0_57 = arith.constant 0 : index
    %c2_58 = arith.constant 2 : index
    %129 = memref.load %arg3[%c0_57, %c2_58] : memref<2x10xf32, #tpu.memory_space<smem>>
    %130 = vector.broadcast %129 : f32 to vector<1x256xf32>
    %131 = arith.mulf %37, %130 : vector<1x256xf32>
    %132 = arith.addf %128, %131 : vector<1x256xf32>
    %c0_59 = arith.constant 0 : index
    %c3_60 = arith.constant 3 : index
    %133 = memref.load %arg3[%c0_59, %c3_60] : memref<2x10xf32, #tpu.memory_space<smem>>
    %134 = vector.broadcast %133 : f32 to vector<1x256xf32>
    %135 = arith.mulf %49, %134 : vector<1x256xf32>
    %136 = arith.addf %132, %135 : vector<1x256xf32>
    %c0_61 = arith.constant 0 : index
    %c4_62 = arith.constant 4 : index
    %137 = memref.load %arg3[%c0_61, %c4_62] : memref<2x10xf32, #tpu.memory_space<smem>>
    %138 = vector.broadcast %137 : f32 to vector<1x256xf32>
    %139 = arith.mulf %61, %138 : vector<1x256xf32>
    %140 = arith.addf %136, %139 : vector<1x256xf32>
    %c0_63 = arith.constant 0 : index
    %c5_64 = arith.constant 5 : index
    %141 = memref.load %arg3[%c0_63, %c5_64] : memref<2x10xf32, #tpu.memory_space<smem>>
    %142 = vector.broadcast %141 : f32 to vector<1x256xf32>
    %143 = arith.mulf %73, %142 : vector<1x256xf32>
    %144 = arith.addf %140, %143 : vector<1x256xf32>
    %c0_65 = arith.constant 0 : index
    %c6_66 = arith.constant 6 : index
    %145 = memref.load %arg3[%c0_65, %c6_66] : memref<2x10xf32, #tpu.memory_space<smem>>
    %146 = vector.broadcast %145 : f32 to vector<1x256xf32>
    %147 = arith.mulf %85, %146 : vector<1x256xf32>
    %148 = arith.addf %144, %147 : vector<1x256xf32>
    %c0_67 = arith.constant 0 : index
    %c7_68 = arith.constant 7 : index
    %149 = memref.load %arg3[%c0_67, %c7_68] : memref<2x10xf32, #tpu.memory_space<smem>>
    %150 = vector.broadcast %149 : f32 to vector<1x256xf32>
    %151 = arith.mulf %97, %150 : vector<1x256xf32>
    %152 = arith.addf %148, %151 : vector<1x256xf32>
    %c0_69 = arith.constant 0 : index
    %c8_70 = arith.constant 8 : index
    %153 = memref.load %arg3[%c0_69, %c8_70] : memref<2x10xf32, #tpu.memory_space<smem>>
    %154 = vector.broadcast %153 : f32 to vector<1x256xf32>
    %155 = arith.mulf %109, %154 : vector<1x256xf32>
    %156 = arith.addf %152, %155 : vector<1x256xf32>
    %c0_71 = arith.constant 0 : index
    %c9_72 = arith.constant 9 : index
    %157 = memref.load %arg3[%c0_71, %c9_72] : memref<2x10xf32, #tpu.memory_space<smem>>
    %158 = vector.broadcast %157 : f32 to vector<1x256xf32>
    %159 = arith.mulf %121, %158 : vector<1x256xf32>
    %160 = arith.addf %156, %159 : vector<1x256xf32>
    %c0_73 = arith.constant 0 : index
    %161 = memref.load %arg4[%c0_73] : memref<2xf32, #tpu.memory_space<smem>>
    %162 = vector.broadcast %161 : f32 to vector<1x256xf32>
    %163 = arith.addf %160, %162 : vector<1x256xf32>
    %c1_74 = arith.constant 1 : index
    %c0_75 = arith.constant 0 : index
    %164 = memref.load %arg3[%c1_74, %c0_75] : memref<2x10xf32, #tpu.memory_space<smem>>
    %165 = vector.broadcast %164 : f32 to vector<1x256xf32>
    %166 = arith.mulf %13, %165 : vector<1x256xf32>
    %c1_76 = arith.constant 1 : index
    %c1_77 = arith.constant 1 : index
    %167 = memref.load %arg3[%c1_76, %c1_77] : memref<2x10xf32, #tpu.memory_space<smem>>
    %168 = vector.broadcast %167 : f32 to vector<1x256xf32>
    %169 = arith.mulf %25, %168 : vector<1x256xf32>
    %170 = arith.addf %166, %169 : vector<1x256xf32>
    %c1_78 = arith.constant 1 : index
    %c2_79 = arith.constant 2 : index
    %171 = memref.load %arg3[%c1_78, %c2_79] : memref<2x10xf32, #tpu.memory_space<smem>>
    %172 = vector.broadcast %171 : f32 to vector<1x256xf32>
    %173 = arith.mulf %37, %172 : vector<1x256xf32>
    %174 = arith.addf %170, %173 : vector<1x256xf32>
    %c1_80 = arith.constant 1 : index
    %c3_81 = arith.constant 3 : index
    %175 = memref.load %arg3[%c1_80, %c3_81] : memref<2x10xf32, #tpu.memory_space<smem>>
    %176 = vector.broadcast %175 : f32 to vector<1x256xf32>
    %177 = arith.mulf %49, %176 : vector<1x256xf32>
    %178 = arith.addf %174, %177 : vector<1x256xf32>
    %c1_82 = arith.constant 1 : index
    %c4_83 = arith.constant 4 : index
    %179 = memref.load %arg3[%c1_82, %c4_83] : memref<2x10xf32, #tpu.memory_space<smem>>
    %180 = vector.broadcast %179 : f32 to vector<1x256xf32>
    %181 = arith.mulf %61, %180 : vector<1x256xf32>
    %182 = arith.addf %178, %181 : vector<1x256xf32>
    %c1_84 = arith.constant 1 : index
    %c5_85 = arith.constant 5 : index
    %183 = memref.load %arg3[%c1_84, %c5_85] : memref<2x10xf32, #tpu.memory_space<smem>>
    %184 = vector.broadcast %183 : f32 to vector<1x256xf32>
    %185 = arith.mulf %73, %184 : vector<1x256xf32>
    %186 = arith.addf %182, %185 : vector<1x256xf32>
    %c1_86 = arith.constant 1 : index
    %c6_87 = arith.constant 6 : index
    %187 = memref.load %arg3[%c1_86, %c6_87] : memref<2x10xf32, #tpu.memory_space<smem>>
    %188 = vector.broadcast %187 : f32 to vector<1x256xf32>
    %189 = arith.mulf %85, %188 : vector<1x256xf32>
    %190 = arith.addf %186, %189 : vector<1x256xf32>
    %c1_88 = arith.constant 1 : index
    %c7_89 = arith.constant 7 : index
    %191 = memref.load %arg3[%c1_88, %c7_89] : memref<2x10xf32, #tpu.memory_space<smem>>
    %192 = vector.broadcast %191 : f32 to vector<1x256xf32>
    %193 = arith.mulf %97, %192 : vector<1x256xf32>
    %194 = arith.addf %190, %193 : vector<1x256xf32>
    %c1_90 = arith.constant 1 : index
    %c8_91 = arith.constant 8 : index
    %195 = memref.load %arg3[%c1_90, %c8_91] : memref<2x10xf32, #tpu.memory_space<smem>>
    %196 = vector.broadcast %195 : f32 to vector<1x256xf32>
    %197 = arith.mulf %109, %196 : vector<1x256xf32>
    %198 = arith.addf %194, %197 : vector<1x256xf32>
    %c1_92 = arith.constant 1 : index
    %c9_93 = arith.constant 9 : index
    %199 = memref.load %arg3[%c1_92, %c9_93] : memref<2x10xf32, #tpu.memory_space<smem>>
    %200 = vector.broadcast %199 : f32 to vector<1x256xf32>
    %201 = arith.mulf %121, %200 : vector<1x256xf32>
    %202 = arith.addf %198, %201 : vector<1x256xf32>
    %c1_94 = arith.constant 1 : index
    %203 = memref.load %arg4[%c1_94] : memref<2xf32, #tpu.memory_space<smem>>
    %204 = vector.broadcast %203 : f32 to vector<1x256xf32>
    %205 = arith.addf %202, %204 : vector<1x256xf32>
    %206 = tpu.concatenate %163, %205 in 0 : vector<1x256xf32>, vector<1x256xf32> -> vector<2x256xf32>
    %c0_95 = arith.constant 0 : index
    %c0_96 = arith.constant 0 : index
    %207 = vector.load %arg5[%c0_95, %c0_96] : memref<2x256xf32, #tpu.memory_space<vmem>>, vector<2x256xf32>
    tpu.vector_store %arg5[%c0_95, %c0_96], %206 {strides = array<i32>} : memref<2x256xf32, #tpu.memory_space<vmem>>, vector<2x256xf32>,
    return
  }
}

</mosaic_0001>

<bundles_post_ra>
// kernel: tpu_custom_call.1
= control target key start
LH: loop header
LB: loop body
LE: loop exit
PB: predicated region body
PF: predicated region fallthrough
CT: control target
= control target key end

     0   :  { %10 = vsyncpa [#allocation4], 0  ;;  %s721_s0 = inlined_call_operand.vmem [shape: f32[2,256], index: 0, kind: input, shape index: {}]   ;;  %s722_s1 = inlined_call_operand.vmem [shape: f32[10,2], index: 1, kind: input, shape index: {}]   ;;  %s723_s2 = inlined_call_operand.vmem [shape: f32[10], index: 2, kind: input, shape index: {}]   ;;  %s724_s3 = inlined_call_operand.vmem [shape: f32[2,10], index: 3, kind: input, shape index: {}]   ;;  %s725_s4 = inlined_call_operand.vmem [shape: f32[2], index: 4, kind: input, shape index: {}]   ;;  %s726_s5 = inlined_call_operand.hbm [shape: f32[2,256], index: 5, kind: output, shape index: {}]  }
   0x1   :  { %11 = vsyncpa [#allocation6], 0 }
   0x2   :  { %12 = vsyncpa [#allocation9], 0  ;;  %s34_s20 = sshll.u32 %s723_s2, 4  ;;  %s35_s20 = int_to_ptr.vmem [resolvable:$true] %s34_s20 }
   0x3   :  { %13 = vsyncpa [#allocation3], 0  ;;  %s21_s23 = sshll.u32 %s722_s1, 4  ;;  %s379_s24 = scalar_lea.vmem %s35_s20, 16  ;;  %s22_s23 = int_to_ptr.vmem [resolvable:$true] %s21_s23 }
   0x4   :  { %p380_p0 = scmp.ne.s32.totalorder %s35_s20, %s379_s24  ;;  %p384_p1 = scmp.lt.s32.totalorder %s35_s20, %s35_s20 }
   0x5   :  { %p385_p2 = scmp.lt.s32.totalorder %s379_s24, %s379_s24 }
   0x7   :  { %p386_p3 = por %p385_p2, %p384_p1 }
   0x9   :  { %p387_p4 = pnand %p386_p3, %p380_p0 }
   0xb   :  { %390 = shalt.err (!%p387_p4)
}
   0xc   :  { %s457_s25 = smov [#allocation5]   ;;  %s391_s26 = scalar_lea.vmem %s22_s23, 256 }
   0xd   :  { %37 = dma.vmem_to_smem %s35_s20, 16, %s457_s25, [#allocation6]  }
   0xe   :  { %p392_p5 = scmp.ne.s32.totalorder %s22_s23, %s391_s26  ;;  %p396_p6 = scmp.lt.s32.totalorder %s22_s23, %s22_s23 }
   0xf   :  { %p397_p7 = scmp.lt.s32.totalorder %s391_s26, %s391_s26 }
  0x11   :  { %p398_p8 = por %p397_p7, %p396_p6 }
  0x13   :  { %p399_p9 = pnand %p398_p8, %p392_p5 }
  0x15   :  { %402 = shalt.err (!%p399_p9)
}
  0x16   :  { %s458_s2 = smov [#allocation2]   ;;  %s459_s27 = smov 128  }
  0x17   :  { %s460_s1 = smov 8   ;;  %s44_s30 = sshll.u32 %s724_s3, 4  ;;  %s45_s30 = int_to_ptr.vmem [resolvable:$true] %s44_s30 }
  0x18   :  { %27 = dma.vmem_to_smem %s22_s23, 256, %s458_s2, [#allocation4], %s459_s27, %s459_s27, %s460_s1  }
  0x19   :  { %s54_s8 = sshll.u32 %s725_s4, 4  ;;  %s403_s9 = scalar_lea.vmem %s45_s30, 32  ;;  %s55_s8 = int_to_ptr.vmem [resolvable:$true] %s54_s8 }
  0x1a   :  { %p404_p10 = scmp.ne.s32.totalorder %s45_s30, %s403_s9  ;;  %p408_p11 = scmp.lt.s32.totalorder %s45_s30, %s45_s30 }
  0x1b   :  { %p409_p12 = scmp.lt.s32.totalorder %s403_s9, %s403_s9 }
  0x1d   :  { %p410_p13 = por %p409_p12, %p408_p11 }
  0x1f   :  { %p411_p0 = pnand %p410_p13, %p404_p10 }
  0x21   :  { %414 = shalt.err (!%p411_p0)
}
  0x22   :  { %s461_s10 = smov [#allocation7]   ;;  %s415_s11 = scalar_lea.vmem %s55_s8, 16 }
  0x23   :  { %47 = dma.vmem_to_smem %s45_s30, 32, %s461_s10, [#allocation6]  }
  0x24   :  { %p416_p1 = scmp.ne.s32.totalorder %s55_s8, %s415_s11  ;;  %p420_p2 = scmp.lt.s32.totalorder %s55_s8, %s55_s8 }
  0x25   :  { %p421_p3 = scmp.lt.s32.totalorder %s415_s11, %s415_s11 }
  0x27   :  { %p422_p4 = por %p421_p3, %p420_p2 }
  0x29   :  { %p423_p5 = pnand %p422_p4, %p416_p1 }
  0x2b   :  { %426 = shalt.err (!%p423_p5)
}
  0x2c   :  { %s462_s3 = smov [#allocation8]  }
  0x2d   :  { %57 = dma.vmem_to_smem %s55_s8, 16, %s462_s3, [#allocation9]  }
  0x2e   :  { %449 = dma.done.wait [#allocation4], 256  }
  0x2f   :  { %450 = vsyncadd [#allocation4], 4294967040 }
  0x30   :  { %451 = dma.done.wait [#allocation6], 48  }
  0x31   :  { %452 = vsyncadd [#allocation6], 4294967248 }
  0x32   :  { %453 = dma.done.wait [#allocation9], 16  }
  0x33   :  { %454 = vsyncadd [#allocation9], 4294967280 }
  0x34   :  { %70 = sfence }
  0x35   :  { %s74_s4 = sld [smem:[#allocation2]]  ;;  %s323_s12 = sld [smem:[#allocation2 + $0x1]]  ;;  %v511_v0 = vld [vmem:[%s721_s0] ss:$2 sm:$0x3]  ;;  %vm290_vm0 = vcmask 1040384  }
  0x36   :  { %s506_s13 = sld [smem:[#allocation5]]  ;;  %v516_v1 = vld [vmem:[%s721_s0 + $0x1] ss:$2 sm:$0x3]  ;;  %s325_s19 = sld [smem:[#allocation2 + $0x81]] }
  0x37   :  { %s324_s14 = sld [smem:[#allocation2 + $0x80]]  ;;  %s518_s20 = sld [smem:[#allocation5 + $0x1]] }
  0x38   :  { %s327_s21 = sld [smem:[#allocation2 + $0x100]]  ;;  %s328_s22 = sld [smem:[#allocation2 + $0x101]] }
  0x39   :  { %s520_s23 = sld [smem:[#allocation5 + $0x2]]  ;;  %s330_s24 = sld [smem:[#allocation2 + $0x180]] }
  0x3a   :  { %s522_s25 = sld [smem:[#allocation2 + $0x181]]  ;;  %s524_s26 = sld [smem:[#allocation5 + $0x3]] }
  0x3b   :  { %v75_v2 = vstv %s74_s4  ;;  %v78_v3 = vstv %s323_s12  ;;  %s526_s2 = sld [smem:[#allocation2 + $0x200]]  ;;  %s528_s27 = sld [smem:[#allocation2 + $0x201]] }
  0x3c   :  { %v76_v4 = vmul.f32 %v75_v2, %v511_v0  ;;  %v79_v5 = vmul.f32 %v516_v1, %v78_v3  ;;  %s532_s0 = sld [smem:[#allocation2 + $0x280]]  ;;  %v82_v7 = vstv %s506_s13  ;;  %v89_v9 = vstv %s325_s19  ;;  %s536_s1 = sld [smem:[#allocation5 + $0x4]] }
  0x3d   :  { %v86_v6 = vstv %s324_s14  ;;  %s538_s28 = sld [smem:[#allocation2 + $0x281]]  ;;  %v90_v11 = vmul.f32 %v516_v1, %v89_v9  ;;  %s541_s29 = sld [smem:[#allocation2 + $0x300]]  ;;  %v93_v14 = vstv %s518_s20 }
  0x3e   :  { %v87_v8 = vmul.f32 %v86_v6, %v511_v0  ;;  %v80_v10 = vadd.f32 %v79_v5, %v76_v4  ;;  %v97_v12 = vstv %s327_s21  ;;  %v100_v13 = vstv %s328_s22  ;;  %s543_s30 = sld [smem:[#allocation2 + $0x301]]  ;;  %s548_s6 = sld [smem:[#allocation5 + $0x5]] }
  0x3f   :  { %v98_v15 = vmul.f32 %v97_v12, %v511_v0  ;;  %v101_v16 = vmul.f32 %v516_v1, %v100_v13  ;;  %v108_v17 = vstv %s330_s24  ;;  %v104_v19 = vstv %s520_s23  ;;  %s553_s7 = sld [smem:[#allocation2 + $0x380]]  ;;  %s555_s8 = sld [smem:[#allocation2 + $0x381]] }
  0x40   :  { %v91_v18 = vadd.f32 %v90_v11, %v87_v8  ;;  %v109_v20 = vmul.f32 %v108_v17, %v511_v0  ;;  %v111_v21 = vstv %s522_s25  ;;  %v557_v22 = vadd.f32 %v82_v7, %v80_v10  ;;  %s561_s9 = sld [smem:[#allocation5 + $0x6]]  ;;  %s565_s10 = sld [smem:[#allocation2 + $0x400]] }
  0x41   :  { %v102_v23 = vadd.f32 %v101_v16, %v98_v15  ;;  %v112_v24 = vmul.f32 %v516_v1, %v111_v21  ;;  %v119_v25 = vstv %s526_s2  ;;  %v122_v27 = vstv %s528_s27  ;;  %s567_s11 = sld [smem:[#allocation2 + $0x401]]  ;;  %s573_s3 = sld [smem:[#allocation5 + $0x7]] }
  0x42   :  { %v120_v26 = vmul.f32 %v119_v25, %v511_v0  ;;  %v569_v28 = vadd.f32 %v93_v14, %v91_v18  ;;  %v115_v30 = vstv %s524_s26  ;;  %v123_v31 = vmul.f32 %v516_v1, %v122_v27  ;;  %s575_s4 = sld [smem:[#allocation5 + $0x8]]  ;;  %s583_s13 = sld [smem:[#allocation2 + $0x481]] }
  0x43   :  { %v113_v29 = vadd.f32 %v112_v24, %v109_v20  ;;  %v577_v32 = vadd.f32 %v104_v19, %v102_v23  ;;  %v130_v33 = vstv %s532_s0  ;;  %v133_v34 = vstv %s538_s28  ;;  %s581_s12 = sld [smem:[#allocation2 + $0x480]]  ;;  %s595_s15 = sld [smem:[#allocation7 + $0x1]] }
  0x44   :  { %v84_v35 = vmax.f32 %v557_v22, 0.0  ;;  %v124_v36 = vadd.f32 %v123_v31, %v120_v26  ;;  %v126_v37 = vstv %s536_s1  ;;  %v131_v38 = vmul.f32 %v130_v33, %v511_v0  ;;  %s588_s14 = sld [smem:[#allocation7]]  ;;  %s597_s16 = sld [smem:[#allocation7 + $0x2]] }
  0x45   :  { %v590_v39 = vadd.f32 %v115_v30, %v113_v29  ;;  %v134_v40 = vmul.f32 %v516_v1, %v133_v34  ;;  %v141_v41 = vstv %s541_s29  ;;  %v144_v42 = vstv %s543_s30  ;;  %s608_s17 = sld [smem:[#allocation7 + $0x3]]  ;;  %s610_s18 = sld [smem:[#allocation7 + $0x4]] }
  0x46   :  { %v95_v43 = vmax.f32 %v569_v28, 0.0  ;;  %v137_v44 = vstv %s548_s6  ;;  %v142_v45 = vmul.f32 %v141_v41, %v511_v0  ;;  %v145_v46 = vmul.f32 %v516_v1, %v144_v42  ;;  %s614_s19 = sld [smem:[#allocation5 + $0x9]]  ;;  %s620_s20 = sld [smem:[#allocation7 + $0x5]] }
  0x47   :  { %v106_v47 = vmax.f32 %v577_v32, 0.0  ;;  %v604_v48 = vadd.f32 %v126_v37, %v124_v36  ;;  %v152_v49 = vstv %s553_s7  ;;  %v155_v50 = vstv %s555_s8  ;;  %s625_s21 = sld [smem:[#allocation7 + $0x6]]  ;;  %s631_s22 = sld [smem:[#allocation7 + $0x7]] }
  0x48   :  { %v135_v51 = vadd.f32 %v134_v40, %v131_v38  ;;  %v146_v52 = vadd.f32 %v145_v46, %v142_v45  ;;  %v153_v53 = vmul.f32 %v152_v49, %v511_v0  ;;  %v156_v54 = vmul.f32 %v516_v1, %v155_v50  ;;  %s638_s23 = sld [smem:[#allocation7 + $0x80]]  ;;  %s640_s24 = sld [smem:[#allocation7 + $0x81]] }
  0x49   :  { %v117_v55 = vmax.f32 %v590_v39, 0.0  ;;  %v148_v56 = vstv %s561_s9  ;;  %v163_v57 = vstv %s565_s10  ;;  %v166_v58 = vstv %s567_s11  ;;  %s646_s25 = sld [smem:[#allocation7 + $0x82]]  ;;  %s656_s26 = sld [smem:[#allocation7 + $0x83]] }
  0x4a   :  { %v157_v59 = vadd.f32 %v156_v54, %v153_v53  ;;  %v159_v60 = vstv %s573_s3  ;;  %v164_v61 = vmul.f32 %v163_v57, %v511_v0  ;;  %v167_v62 = vmul.f32 %v516_v1, %v166_v58  ;;  %s658_s2 = sld [smem:[#allocation7 + $0x84]]  ;;  %s664_s27 = sld [smem:[#allocation7 + $0x8]] }
  0x4b   :  { %v128_v63 = vmax.f32 %v604_v48, 0.0  ;;  %v170_v2 = vstv %s575_s4  ;;  %v174_v3 = vstv %s581_s12  ;;  %v177_v4 = vstv %s583_s13  ;;  %s670_s0 = sld [smem:[#allocation7 + $0x85]]  ;;  %s677_s1 = sld [smem:[#allocation7 + $0x9]] }
  0x4c   :  { %v633_v5 = vadd.f32 %v137_v44, %v135_v51  ;;  %v635_v6 = vadd.f32 %v148_v56, %v146_v52  ;;  %v168_v7 = vadd.f32 %v167_v62, %v164_v61  ;;  %v175_v8 = vmul.f32 %v174_v3, %v511_v0  ;;  %s679_s28 = sld [smem:[#allocation7 + $0x86]]  ;;  %s686_s29 = sld [smem:[#allocation7 + $0x87]] }
  0x4d   :  { %v178_v9 = vmul.f32 %v516_v1, %v177_v4  ;;  %v185_v10 = vstv %s588_s14  ;;  %v188_v11 = vstv %s595_s15  ;;  %v192_v12 = vstv %s597_s16  ;;  %s697_s30 = sld [smem:[#allocation7 + $0x88]]  ;;  %s369_s6 = sld [smem:[#allocation7 + $0x89]] }
  0x4e   :  { %v648_v13 = vadd.f32 %v159_v60, %v157_v59  ;;  %v650_v14 = vadd.f32 %v170_v2, %v168_v7  ;;  %v186_v0 = vmul.f32 %v185_v10, %v84_v35  ;;  %v189_v15 = vmul.f32 %v188_v11, %v95_v43  ;;  %s223_s7 = sld [smem:[#allocation8]]  ;;  %s370_s8 = sld [smem:[#allocation8 + $0x1]] }
  0x4f   :  { %v179_v1 = vadd.f32 %v178_v9, %v175_v8  ;;  %v193_v16 = vmul.f32 %v192_v12, %v106_v47  ;;  %v196_v17 = vstv %s608_s17  ;;  %v200_v18 = vstv %s610_s18  ;;  %s463_s9 = smov [#allocation10]  }
  0x50   :  { %v139_v19 = vmax.f32 %v633_v5, 0.0  ;;  %v181_v20 = vstv %s614_s19  ;;  %v190_v21 = vadd.f32 %v189_v15, %v186_v0  ;;  %v197_v23 = vmul.f32 %v196_v17, %v117_v55  ;;  %s311_s10 = sshll.u32 %s463_s9, 4  ;;  %s312_s10 = int_to_ptr.vmem [resolvable:$true] %s311_s10 }
  0x51   :  { %v150_v24 = vmax.f32 %v635_v6, 0.0  ;;  %v204_v25 = vstv %s620_s20  ;;  %v201_v27 = vmul.f32 %v200_v18, %v128_v63  ;;  %v208_v29 = vstv %s625_s21  ;;  %s427_s11 = scalar_lea.vmem %s312_s10, 64  ;;  %p432_p7 = scmp.lt.s32.totalorder %s312_s10, %s312_s10 }
  0x52   :  { %v194_v26 = vadd.f32 %v193_v16, %v190_v21  ;;  %v161_v30 = vmax.f32 %v648_v13, 0.0  ;;  %v172_v31 = vmax.f32 %v650_v14, 0.0  ;;  %v182_v33 = vadd.f32 %v181_v20, %v179_v1  ;;  %p428_p6 = scmp.ne.s32.totalorder %s312_s10, %s427_s11  ;;  %p433_p8 = scmp.lt.s32.totalorder %s427_s11, %s427_s11 }
  0x53   :  { %v212_v34 = vstv %s631_s22  ;;  %v205_v37 = vmul.f32 %v204_v25, %v139_v19  ;;  %v227_v38 = vstv %s638_s23  ;;  %v230_v40 = vstv %s640_s24 }
  0x54   :  { %v198_v36 = vadd.f32 %v197_v23, %v194_v26  ;;  %v209_v41 = vmul.f32 %v208_v29, %v150_v24  ;;  %v228_v42 = vmul.f32 %v227_v38, %v84_v35  ;;  %v231_v44 = vmul.f32 %v230_v40, %v95_v43  ;;  %p434_p9 = por %p433_p8, %p432_p7 }
  0x55   :  { %v234_v45 = vstv %s646_s25  ;;  %v238_v50 = vstv %s656_s26  ;;  %v242_v51 = vstv %s658_s2  ;;  %v216_v52 = vstv %s664_s27 }
  0x56   :  { %v202_v46 = vadd.f32 %v201_v27, %v198_v36  ;;  %v235_v49 = vmul.f32 %v234_v45, %v106_v47  ;;  %v232_v53 = vadd.f32 %v231_v44, %v228_v42  ;;  %v239_v22 = vmul.f32 %v238_v50, %v117_v55  ;;  %p435_p10 = pnand %p434_p9, %p428_p6 }
  0x57   :  { %v213_v28 = vmul.f32 %v212_v34, %v161_v30  ;;  %v246_v43 = vstv %s670_s0  ;;  %v183_v54 = vmax.f32 %v182_v33, 0.0  ;;  %v243_v32 = vmul.f32 %v242_v51, %v128_v63 }
  0x58   :  { %v206_v35 = vadd.f32 %v205_v37, %v202_v46  ;;  %v236_v56 = vadd.f32 %v235_v49, %v232_v53  ;;  %v217_v57 = vmul.f32 %v216_v52, %v172_v31  ;;  %v220_v58 = vstv %s677_s1 }
  0x59   :  { %v250_v59 = vstv %s679_s28  ;;  %v247_v61 = vmul.f32 %v246_v43, %v139_v19  ;;  %v254_v55 = vstv %s686_s29  ;;  %v221_v62 = vmul.f32 %v220_v58, %v183_v54 }
  0x5a   :  { %v210_v47 = vadd.f32 %v209_v41, %v206_v35  ;;  %v240_v60 = vadd.f32 %v239_v22, %v236_v56  ;;  %v251_v3 = vmul.f32 %v250_v59, %v150_v24  ;;  %v269_v4 = vlaneseq }
  0x5b   :  { %v258_v6 = vstv %s697_s30  ;;  %v255_v48 = vmul.f32 %v254_v55, %v161_v30  ;;  %v262_v8 = vstv %s369_s6  ;;  %v224_v12 = vstv %s223_s7 }
  0x5c   :  { %v214_v39 = vadd.f32 %v213_v28, %v210_v47  ;;  %v244_v2 = vadd.f32 %v243_v32, %v240_v60  ;;  %v259_v10 = vmul.f32 %v258_v6, %v172_v31  ;;  %v270_v11 = vshrl.u32 %v269_v4, 7 }
  0x5d   :  { %v263_v14 = vmul.f32 %v262_v8, %v183_v54  ;;  %v266_v17 = vstv %s370_s8 }
  0x5e   :  { %v218_v5 = vadd.f32 %v217_v57, %v214_v39  ;;  %v248_v7 = vadd.f32 %v247_v61, %v244_v2  ;;  %v271_v1 = vsub.s32 0, %v270_v11  ;;  %v275_v16 = vsub.s32 1, %v270_v11 }
  0x60   :  { %v222_v63 = vadd.f32 %v221_v62, %v218_v5  ;;  %v252_v9 = vadd.f32 %v251_v3, %v248_v7 }
  0x62   :  { %v256_v13 = vadd.f32 %v255_v48, %v252_v9  ;;  %v225_v0 = vadd.f32 %v224_v12, %v222_v63 }
  0x64   :  { %v260_v15 = vadd.f32 %v259_v10, %v256_v13  ;;  %v272_v20 = vrot.slane %v225_v0, %v271_v1  ;;  %v276_v21 = vrot.slane %v225_v0, %v275_v16 }
  0x66   :  { %v264_v18 = vadd.f32 %v263_v14, %v260_v15 }
  0x68   :  { %v267_v19 = vadd.f32 %v266_v17, %v264_v18 }
  0x6a   :  { %v283_v23 = vrot.slane %v267_v19, %v271_v1  ;;  %v287_v24 = vrot.slane %v267_v19, %v275_v16 }
  0x6c   :  { %v291_v25 = vsel %vm290_vm0, %v272_v20, %v283_v23  ;;  %v292_v26 = vsel %vm290_vm0, %v276_v21, %v287_v24 }
  0x6d   :  { %v295_v27 = vcombine.low %v291_v25, %v292_v26 }
  0x6f   :  { %371 = vst.sshfl [vmem:[#allocation10] sm:$0x33 pattern:$0x76325410] %v295_v27 }
  0x70   :  { %438 = shalt.err (!%p435_p10)
}
  0x71   :  { %s439_s12 = scalar_lea.hbm %s726_s5, 64 }
  0x72   :  { %p440_p11 = scmp.ne.s32.totalorder %s726_s5, %s439_s12  ;;  %p443_p12 = scmp.lt.u32.totalorder %s439_s12, %s726_s5 }
  0x74   :  { %p445_p13 = pnand %p443_p12, %p440_p11 }
  0x76   :  { %448 = shalt.err (!%p445_p13)
}
  0x77   :  { %314 = dma.vmem_to_hbm [thread:$0]  %s312_s10, 64, %s726_s5, [#allocation3]  }
  0x78   :  { %455 = dma.done.wait [#allocation3], 64  }
  0x79   :  { %456 = vsyncadd [#allocation3], 4294967232 }
  0x7a   :  { %318 = vsyncpa [#allocation3], 1 }
  0x7b   :  { %319 = vsyncpa [#allocation4], 1 }
  0x7c   :  { %320 = vsyncpa [#allocation6], 1 }
  0x7d   :  { %321 = vsyncpa [#allocation9], 1 }

</bundles_post_ra>
